<compile_context>
chip_gen: v7x
topology: tpu7x:2x2x1
jax: 0.10.0
libtpu: 0.0.40
codegen_flags: <defaults>
</compile_context>

<pallas_src>
import math
import functools

import jax
import jax.numpy as jnp
from jax import lax  # noqa: F401  (kept for parity with other kernels)
from jax.experimental import pallas as pl
from jax.experimental.pallas import tpu as pltpu


# ---------------------------------------------------------------------------
# Kernel A: fused Q/K/V projection, output in head-major (B, nh, S, d) layout.
# ---------------------------------------------------------------------------
def _qkv_proj_kernel(x_ref, wq_ref, bq_ref, wk_ref, bk_ref, wv_ref, bv_ref,
                     q_ref, k_ref, v_ref, *, num_head, head_dim, scale):
    """One (batch, row-tile) grid step.

    x_ref      : (1, Tm, H) input rows (compute dtype, e.g. bf16)
    w*_ref     : (H, H) weights (in x out, compute dtype); b*_ref: (1, H) f32
    q/k/v_ref  : (1, nh, Tm, d) head-major outputs (compute dtype)
    """
    x = x_ref[0]                                                    # (Tm, H)
    q = jnp.dot(x, wq_ref[...], preferred_element_type=jnp.float32) + bq_ref[...]
    q = q * scale                                                   # fold 1/sqrt(d) into Q
    k = jnp.dot(x, wk_ref[...], preferred_element_type=jnp.float32) + bk_ref[...]
    v = jnp.dot(x, wv_ref[...], preferred_element_type=jnp.float32) + bv_ref[...]

    # (Tm, H) -> (nh, Tm, d): one layout change per row tile, done here (once)
    # instead of per kv step inside the flash kernel. num_head is small, so a
    # static unrolled loop is fine (it is not in the hot kv loop).
    for h in range(num_head):
        lo = h * head_dim
        q_ref[0, h] = q[:, lo:lo + head_dim].astype(q_ref.dtype)
        k_ref[0, h] = k[:, lo:lo + head_dim].astype(k_ref.dtype)
        v_ref[0, h] = v[:, lo:lo + head_dim].astype(v_ref.dtype)


# ---------------------------------------------------------------------------
# Kernel B: flash attention (online softmax over kv tiles) + output projection.
# ---------------------------------------------------------------------------
def _flash_out_kernel(q_ref, k_ref, v_ref, wo_ref, bo_ref, o_ref,
                      m_scr, l_scr, acc_scr, ctx_scr, *, num_head, head_dim):
    """One (batch, q-tile, kv-tile) grid step.

    q_ref   : (1, nh, Tq, d)  pre-scaled Q (compute dtype)
    k_ref   : (1, nh, Tk, d)  K (compute dtype)
    v_ref   : (1, nh, Tk, d)  V (compute dtype)
    wo_ref  : (H, H) output-projection weight; bo_ref: (1, H) f32 bias
    o_ref   : (1, Tq, H) final output tile (written on the last kv step)
    m/l_scr : (nh, Tq, 1) running max / softmax denominator (f32)
    acc_scr : (nh, Tq, d) running P@V accumulator (f32)
    ctx_scr : (Tq, H) slab for the single full-width Wo matmul (f32)
    """
    kv = pl.program_id(2)

    @pl.when(kv == 0)
    def _init():
        m_scr[...] = jnp.full(m_scr.shape, -jnp.inf, dtype=jnp.float32)
        l_scr[...] = jnp.zeros(l_scr.shape, dtype=jnp.float32)
        acc_scr[...] = jnp.zeros(acc_scr.shape, dtype=jnp.float32)

    q = q_ref[0]                                                    # (nh, Tq, d)
    k = k_ref[0]                                                    # (nh, Tk, d)
    v = v_ref[0]                                                    # (nh, Tk, d)

    # Q @ K^T for all heads at once (contract last dim, no explicit transpose).
    s = jnp.einsum("hqd,hkd->hqk", q, k,
                   preferred_element_type=jnp.float32)              # (nh, Tq, Tk)

    m_prev = m_scr[...]
    m_new = jnp.maximum(m_prev, jnp.max(s, axis=-1, keepdims=True))
    alpha = jnp.exp(m_prev - m_new)
    p = jnp.exp(s - m_new)
    l_scr[...] = alpha * l_scr[...] + jnp.sum(p, axis=-1, keepdims=True)
    acc_scr[...] = alpha * acc_scr[...] + jnp.einsum(
        "hqk,hkd->hqd", p.astype(v.dtype), v,
        preferred_element_type=jnp.float32)
    m_scr[...] = m_new

    @pl.when(kv == pl.num_programs(2) - 1)
    def _finalize():
        inv_l = pl.reciprocal(l_scr[...], approx=True)              # (nh, Tq, 1)
        ctx = acc_scr[...] * inv_l                                  # (nh, Tq, d)
        # Assemble a (Tq, H) slab once per q tile, then ONE full-width matmul
        # against Wo (H-wide contraction keeps the MXU fully utilized).
        for h in range(num_head):
            lo = h * head_dim
            ctx_scr[:, lo:lo + head_dim] = ctx[h]
        out = jnp.dot(ctx_scr[...].astype(wo_ref.dtype), wo_ref[...],
                      preferred_element_type=jnp.float32) + bo_ref[...]
        o_ref[0] = out.astype(o_ref.dtype)


# ---------------------------------------------------------------------------
# Helpers
# ---------------------------------------------------------------------------
def _pick_tile(s, max_tile):
    """Largest multiple-of-8 divisor of s that is <= max_tile (else s itself)."""
    if s <= max_tile:
        return s
    t = (max_tile // 8) * 8
    while t >= 8:
        if s % t == 0:
            return t
        t -= 8
    return s


def _flash_vmem_bytes(num_head, head_dim, tq, tk, hidden, cb, out_bytes):
    """Estimated flash-kernel VMEM working set (double-buffered I/O included)."""
    return int(
        2 * num_head * tq * head_dim * cb          # q tile
        + 4 * num_head * tk * head_dim * cb        # k + v tiles
        + hidden * hidden * cb + hidden * 4        # wo (single-buffered) + bo
        + 2 * tq * hidden * out_bytes              # output tile
        + num_head * tq * (head_dim + 2) * 4       # acc + m + l scratch
        + tq * hidden * 4                          # ctx slab
        + 2 * num_head * tq * tk * 4)              # s / p temporaries


def _constant_block_spec(block_shape, index_map):
    """BlockSpec for a constant (weight/bias) operand.

    The index_map never changes, so the block is fetched once; Buffered(1)
    removes the useless second buffer (halves resident weight VMEM). Falls
    back to the default spec on JAX versions without pipeline_mode.
    """
    try:
        return pl.BlockSpec(block_shape, index_map, pipeline_mode=pl.Buffered(1))
    except (TypeError, AttributeError):
        return pl.BlockSpec(block_shape, index_map)


# ---------------------------------------------------------------------------
# Public wrapper
# ---------------------------------------------------------------------------
def multi_head_attention(x, params, num_head, *, compute_dtype=jnp.bfloat16,
                         max_tile_q=256, max_tile_k=256,
                         vmem_budget_bytes=40 * 2**20):
    """x: (B, S, H). params: dict of (in x out) weights and (H,) biases."""
    B, S, H = x.shape
    assert H % num_head == 0, "hidden_dim must be divisible by num_head"
    d = H // num_head
    scale = 1.0 / math.sqrt(d)

    cb = jnp.dtype(compute_dtype).itemsize
    out_bytes = jnp.dtype(x.dtype).itemsize

    # Tile sizes: largest divisors <= max, then shrink until the flash working
    # set fits a v7x-safe VMEM budget (64 MiB physical there).
    Tm = _pick_tile(S, 256)
    Tq = _pick_tile(S, max_tile_q)
    Tk = _pick_tile(S, max_tile_k)
    while (_flash_vmem_bytes(num_head, d, Tq, Tk, H, cb, out_bytes)
           > vmem_budget_bytes and Tk >= 16 and Tk % 16 == 0):
        Tk //= 2
    while (_flash_vmem_bytes(num_head, d, Tq, Tk, H, cb, out_bytes)
           > vmem_budget_bytes and Tq >= 16 and Tq % 16 == 0):
        Tq //= 2
    nm, nq, nk = S // Tm, S // Tq, S // Tk

    # bf16 operands, f32 biases (added after f32 accumulation).
    x_c = x.astype(compute_dtype)
    wq_c = params["wq"].astype(compute_dtype)
    wk_c = params["wk"].astype(compute_dtype)
    wv_c = params["wv"].astype(compute_dtype)
    wo_c = params["wo"].astype(compute_dtype)
    bq2 = params["bq"].reshape(1, H).astype(jnp.float32)
    bk2 = params["bk"].reshape(1, H).astype(jnp.float32)
    bv2 = params["bv"].reshape(1, H).astype(jnp.float32)
    bo2 = params["bo"].reshape(1, H).astype(jnp.float32)

    # ---- Kernel A: Q/K/V projection (hoisted out of the flash grid) --------
    w_spec = _constant_block_spec((H, H), lambda b, m: (0, 0))
    b_spec = _constant_block_spec((1, H), lambda b, m: (0, 0))
    x_spec = pl.BlockSpec((1, Tm, H), lambda b, m: (b, m, 0))
    head_spec = pl.BlockSpec((1, num_head, Tm, d), lambda b, m: (b, 0, m, 0))

    est_a = int(2 * Tm * H * cb + 3 * H * H * cb + 3 * H * 4
                + 6 * Tm * H * cb + 3 * Tm * H * 4)
    vmem_a = int(min(64 * 2**20, max(32 * 2**20, 2 * est_a)))
    qkv_cost = pl.CostEstimate(
        flops=int(2 * 3 * B * S * H * H),
        transcendentals=0,
        bytes_accessed=int(B * S * H * cb + 3 * H * H * cb + 3 * H * 4
                           + 3 * B * S * H * cb))

    q_h, k_h, v_h = pl.pallas_call(
        functools.partial(_qkv_proj_kernel,
                          num_head=num_head, head_dim=d, scale=scale),
        out_shape=[jax.ShapeDtypeStruct((B, num_head, S, d), compute_dtype)] * 3,
        grid_spec=pltpu.PrefetchScalarGridSpec(
            num_scalar_prefetch=0,
            grid=(B, nm),
            in_specs=[x_spec, w_spec, b_spec, w_spec, b_spec, w_spec, b_spec],
            out_specs=[head_spec, head_spec, head_spec],
        ),
        compiler_params=pltpu.CompilerParams(
            dimension_semantics=("parallel", "parallel"),
            vmem_limit_bytes=vmem_a),
        cost_estimate=qkv_cost,
    )(x_c, wq_c, bq2, wk_c, bk2, wv_c, bv2)

    # ---- Kernel B: flash attention + fused output projection ---------------
    q_spec = pl.BlockSpec((1, num_head, Tq, d), lambda b, qi, kv: (b, 0, qi, 0))
    kv_spec = pl.BlockSpec((1, num_head, Tk, d), lambda b, qi, kv: (b, 0, kv, 0))
    wo_spec = _constant_block_spec((H, H), lambda b, qi, kv: (0, 0))
    bo_spec = _constant_block_spec((1, H), lambda b, qi, kv: (0, 0))
    out_spec = pl.BlockSpec((1, Tq, H), lambda b, qi, kv: (b, qi, 0))

    est_b = _flash_vmem_bytes(num_head, d, Tq, Tk, H, cb, out_bytes)
    vmem_b = int(min(64 * 2**20, max(32 * 2**20, 2 * est_b)))
    flash_cost = pl.CostEstimate(
        flops=int(2 * 2 * B * num_head * S * S * d + 2 * B * S * H * H),
        transcendentals=int(B * num_head * S * S),
        bytes_accessed=int(3 * B * S * H * cb + H * H * cb + H * 4
                           + B * S * H * out_bytes))

    return pl.pallas_call(
        functools.partial(_flash_out_kernel, num_head=num_head, head_dim=d),
        out_shape=jax.ShapeDtypeStruct((B, S, H), x.dtype),
        grid_spec=pltpu.PrefetchScalarGridSpec(
            num_scalar_prefetch=0,
            grid=(B, nq, nk),
            in_specs=[q_spec, kv_spec, kv_spec, wo_spec, bo_spec],
            out_specs=out_spec,
            scratch_shapes=[
                pltpu.VMEM((num_head, Tq, 1), jnp.float32),   # running max
                pltpu.VMEM((num_head, Tq, 1), jnp.float32),   # running denom
                pltpu.VMEM((num_head, Tq, d), jnp.float32),   # P@V accumulator
                pltpu.VMEM((Tq, H), jnp.float32),             # ctx slab for Wo
            ]),
        compiler_params=pltpu.CompilerParams(
            dimension_semantics=("parallel", "parallel", "arbitrary"),
            vmem_limit_bytes=vmem_b),
        cost_estimate=flash_cost,
    )(q_h, k_h, v_h, wo_c, bo2)


# ---------------------------------------------------------------------------
# Pure-JAX reference matching the PyTorch forward (dropout=0, mask is a no-op).
# ---------------------------------------------------------------------------
def reference_mha(x, params, num_head):
    B, S, H = x.shape
    d = H // num_head
    q = x @ params["wq"] + params["bq"]
    k = x @ params["wk"] + params["bk"]
    v = x @ params["wv"] + params["bv"]
    q = q.reshape(B, S, num_head, d).transpose(0, 2, 1, 3)
    k = k.reshape(B, S, num_head, d).transpose(0, 2, 1, 3)
    v = v.reshape(B, S, num_head, d).transpose(0, 2, 1, 3)
    aw = jnp.einsum("bhqd,bhkd->bhqk", q, k) / math.sqrt(d)
    aw = jax.nn.softmax(aw, axis=-1)
    out = jnp.einsum("bhqk,bhkd->bhqd", aw, v)
    out = out.transpose(0, 2, 1, 3).reshape(B, S, H)
    return out @ params["wo"] + params["bo"]


if __name__ == "__main__":
    batch, seq_len, hidden_dim, num_head = 2, 8, 32, 4

    key = jax.random.PRNGKey(0)
    keys = jax.random.split(key, 10)

    # Deterministic parameter init (uniform, PyTorch Linear-style bound).
    bound = 1.0 / math.sqrt(hidden_dim)

    def init_w(k):
        return jax.random.uniform(k, (hidden_dim, hidden_dim),
                                  minval=-bound, maxval=bound, dtype=jnp.float32)

    def init_b(k):
        return jax.random.uniform(k, (hidden_dim,),
                                  minval=-bound, maxval=bound, dtype=jnp.float32)

    params = {
        "wq": init_w(keys[0]), "bq": init_b(keys[1]),
        "wk": init_w(keys[2]), "bk": init_b(keys[3]),
        "wv": init_w(keys[4]), "bv": init_b(keys[5]),
        "wo": init_w(keys[6]), "bo": init_b(keys[7]),
    }

    x = jax.random.normal(keys[8], (batch, seq_len, hidden_dim), dtype=jnp.float32)

    ref = reference_mha(x, params, num_head)

    # Default fast path: bf16 matmul operands, f32 accumulation.
    out_bf16 = jax.block_until_ready(multi_head_attention(x, params, num_head))
    assert out_bf16.shape == (batch, seq_len, hidden_dim)
    assert jnp.allclose(out_bf16, ref, atol=5e-2, rtol=5e-2), \
        "bf16 kernel mismatch vs f32 reference"

    # Full-precision path for a tight correctness check (approx reciprocal only).
    out_f32 = jax.block_until_ready(
        multi_head_attention(x, params, num_head, compute_dtype=jnp.float32))
    assert jnp.allclose(out_f32, ref, atol=5e-3, rtol=5e-3), \
        "f32 kernel mismatch vs reference"

    print("KERNEL_OK")
</pallas_src>

<mosaic_0001>
module attributes {stable_mosaic.version = 11 : i64} {
  func.func @_qkv_proj_kernel(%arg0: i32, %arg1: i32, %arg2: memref<1x8x32xbf16, #tpu.memory_space<vmem>>, %arg3: memref<32x32xbf16, #tpu.memory_space<vmem>>, %arg4: memref<1x32xf32, #tpu.memory_space<vmem>>, %arg5: memref<32x32xbf16, #tpu.memory_space<vmem>>, %arg6: memref<1x32xf32, #tpu.memory_space<vmem>>, %arg7: memref<32x32xbf16, #tpu.memory_space<vmem>>, %arg8: memref<1x32xf32, #tpu.memory_space<vmem>>, %arg9: memref<1x4x8x8xbf16, #tpu.memory_space<vmem>>, %arg10: memref<1x4x8x8xbf16, #tpu.memory_space<vmem>>, %arg11: memref<1x4x8x8xbf16, #tpu.memory_space<vmem>>) attributes {dimension_semantics = [#tpu.dimension_semantics<parallel>, #tpu.dimension_semantics<parallel>], iteration_bounds = array<i64: 2, 1>, scalar_prefetch = 0 : i64, scratch_operands = 0 : i64, tpu.core_type = #tpu.core_type<tc>, window_params = [{transform_indices = @transform_0, window_bounds = array<i64: 1, 8, 32>}, {pipeline_mode = #tpu.pipeline_mode<synchronous>, transform_indices = @transform_1, window_bounds = array<i64: 32, 32>}, {pipeline_mode = #tpu.pipeline_mode<synchronous>, transform_indices = @transform_2, window_bounds = array<i64: 1, 32>}, {pipeline_mode = #tpu.pipeline_mode<synchronous>, transform_indices = @transform_3, window_bounds = array<i64: 32, 32>}, {pipeline_mode = #tpu.pipeline_mode<synchronous>, transform_indices = @transform_4, window_bounds = array<i64: 1, 32>}, {pipeline_mode = #tpu.pipeline_mode<synchronous>, transform_indices = @transform_5, window_bounds = array<i64: 32, 32>}, {pipeline_mode = #tpu.pipeline_mode<synchronous>, transform_indices = @transform_6, window_bounds = array<i64: 1, 32>}, {transform_indices = @transform_7, window_bounds = array<i64: 1, 4, 8, 8>}, {transform_indices = @transform_8, window_bounds = array<i64: 1, 4, 8, 8>}, {transform_indices = @transform_9, window_bounds = array<i64: 1, 4, 8, 8>}]} {
    %c0 = arith.constant 0 : index
    %c0_0 = arith.constant 0 : index
    %c0_1 = arith.constant 0 : index
    %0 = vector.load %arg2[%c0, %c0_0, %c0_1] : memref<1x8x32xbf16, #tpu.memory_space<vmem>>, vector<1x8x32xbf16>
    %1 = vector.shape_cast %0 : vector<1x8x32xbf16> to vector<8x32xbf16>
    %c0_2 = arith.constant 0 : index
    %c0_3 = arith.constant 0 : index
    %2 = vector.load %arg3[%c0_2, %c0_3] : memref<32x32xbf16, #tpu.memory_space<vmem>>, vector<32x32xbf16>
    %cst = arith.constant dense<0.000000e+00> : vector<8x32xf32>
    %3 = tpu.matmul %1, %2, %cst {dimension_numbers = #tpu.dot_dimension_numbers<[1], [0], [0], [1], [0, 0, 1, 1], [], []>} : vector<8x32xbf16>, vector<32x32xbf16>, vector<8x32xf32> -> vector<8x32xf32>
    %c0_4 = arith.constant 0 : index
    %c0_5 = arith.constant 0 : index
    %4 = vector.load %arg4[%c0_4, %c0_5] : memref<1x32xf32, #tpu.memory_space<vmem>>, vector<1x32xf32>
    %5 = vector.broadcast %4 : vector<1x32xf32> to vector<8x32xf32>
    %6 = arith.addf %3, %5 : vector<8x32xf32>
    %cst_6 = arith.constant 0.353553385 : f32
    %7 = vector.broadcast %cst_6 : f32 to vector<8x32xf32>
    %8 = arith.mulf %6, %7 : vector<8x32xf32>
    %c0_7 = arith.constant 0 : index
    %c0_8 = arith.constant 0 : index
    %9 = vector.load %arg5[%c0_7, %c0_8] : memref<32x32xbf16, #tpu.memory_space<vmem>>, vector<32x32xbf16>
    %cst_9 = arith.constant dense<0.000000e+00> : vector<8x32xf32>
    %10 = tpu.matmul %1, %9, %cst_9 {dimension_numbers = #tpu.dot_dimension_numbers<[1], [0], [0], [1], [0, 0, 1, 1], [], []>} : vector<8x32xbf16>, vector<32x32xbf16>, vector<8x32xf32> -> vector<8x32xf32>
    %c0_10 = arith.constant 0 : index
    %c0_11 = arith.constant 0 : index
    %11 = vector.load %arg6[%c0_10, %c0_11] : memref<1x32xf32, #tpu.memory_space<vmem>>, vector<1x32xf32>
    %12 = vector.broadcast %11 : vector<1x32xf32> to vector<8x32xf32>
    %13 = arith.addf %10, %12 : vector<8x32xf32>
    %c0_12 = arith.constant 0 : index
    %c0_13 = arith.constant 0 : index
    %14 = vector.load %arg7[%c0_12, %c0_13] : memref<32x32xbf16, #tpu.memory_space<vmem>>, vector<32x32xbf16>
    %cst_14 = arith.constant dense<0.000000e+00> : vector<8x32xf32>
    %15 = tpu.matmul %1, %14, %cst_14 {dimension_numbers = #tpu.dot_dimension_numbers<[1], [0], [0], [1], [0, 0, 1, 1], [], []>} : vector<8x32xbf16>, vector<32x32xbf16>, vector<8x32xf32> -> vector<8x32xf32>
    %c0_15 = arith.constant 0 : index
    %c0_16 = arith.constant 0 : index
    %16 = vector.load %arg8[%c0_15, %c0_16] : memref<1x32xf32, #tpu.memory_space<vmem>>, vector<1x32xf32>
    %17 = vector.broadcast %16 : vector<1x32xf32> to vector<8x32xf32>
    %18 = arith.addf %15, %17 : vector<8x32xf32>
    %19 = vector.extract_strided_slice %8 {offsets = [0, 0], sizes = [8, 8], strides = [1, 1]} : vector<8x32xf32> to vector<8x8xf32>
    %20 = arith.truncf %19 : vector<8x8xf32> to vector<8x8xbf16>
    %c0_17 = arith.constant 0 : index
    %c0_18 = arith.constant 0 : index
    %c0_19 = arith.constant 0 : index
    %c0_20 = arith.constant 0 : index
    %21 = vector.load %arg9[%c0_17, %c0_18, %c0_19, %c0_20] : memref<1x4x8x8xbf16, #tpu.memory_space<vmem>>, vector<1x1x8x8xbf16>
    %22 = vector.shape_cast %21 : vector<1x1x8x8xbf16> to vector<8x8xbf16>
    %23 = vector.shape_cast %20 : vector<8x8xbf16> to vector<1x1x8x8xbf16>
    tpu.vector_store %arg9[%c0_17, %c0_18, %c0_19, %c0_20], %23 {strides = array<i32>} : memref<1x4x8x8xbf16, #tpu.memory_space<vmem>>, vector<1x1x8x8xbf16>,
    %24 = vector.extract_strided_slice %13 {offsets = [0, 0], sizes = [8, 8], strides = [1, 1]} : vector<8x32xf32> to vector<8x8xf32>
    %25 = arith.truncf %24 : vector<8x8xf32> to vector<8x8xbf16>
    %c0_21 = arith.constant 0 : index
    %c0_22 = arith.constant 0 : index
    %c0_23 = arith.constant 0 : index
    %c0_24 = arith.constant 0 : index
    %26 = vector.load %arg10[%c0_21, %c0_22, %c0_23, %c0_24] : memref<1x4x8x8xbf16, #tpu.memory_space<vmem>>, vector<1x1x8x8xbf16>
    %27 = vector.shape_cast %26 : vector<1x1x8x8xbf16> to vector<8x8xbf16>
    %28 = vector.shape_cast %25 : vector<8x8xbf16> to vector<1x1x8x8xbf16>
    tpu.vector_store %arg10[%c0_21, %c0_22, %c0_23, %c0_24], %28 {strides = array<i32>} : memref<1x4x8x8xbf16, #tpu.memory_space<vmem>>, vector<1x1x8x8xbf16>,
    %29 = vector.extract_strided_slice %18 {offsets = [0, 0], sizes = [8, 8], strides = [1, 1]} : vector<8x32xf32> to vector<8x8xf32>
    %30 = arith.truncf %29 : vector<8x8xf32> to vector<8x8xbf16>
    %c0_25 = arith.constant 0 : index
    %c0_26 = arith.constant 0 : index
    %c0_27 = arith.constant 0 : index
    %c0_28 = arith.constant 0 : index
    %31 = vector.load %arg11[%c0_25, %c0_26, %c0_27, %c0_28] : memref<1x4x8x8xbf16, #tpu.memory_space<vmem>>, vector<1x1x8x8xbf16>
    %32 = vector.shape_cast %31 : vector<1x1x8x8xbf16> to vector<8x8xbf16>
    %33 = vector.shape_cast %30 : vector<8x8xbf16> to vector<1x1x8x8xbf16>
    tpu.vector_store %arg11[%c0_25, %c0_26, %c0_27, %c0_28], %33 {strides = array<i32>} : memref<1x4x8x8xbf16, #tpu.memory_space<vmem>>, vector<1x1x8x8xbf16>,
    %34 = vector.extract_strided_slice %8 {offsets = [0, 8], sizes = [8, 8], strides = [1, 1]} : vector<8x32xf32> to vector<8x8xf32>
    %35 = arith.truncf %34 : vector<8x8xf32> to vector<8x8xbf16>
    %c0_29 = arith.constant 0 : index
    %c1 = arith.constant 1 : index
    %c0_30 = arith.constant 0 : index
    %c0_31 = arith.constant 0 : index
    %36 = vector.load %arg9[%c0_29, %c1, %c0_30, %c0_31] : memref<1x4x8x8xbf16, #tpu.memory_space<vmem>>, vector<1x1x8x8xbf16>
    %37 = vector.shape_cast %36 : vector<1x1x8x8xbf16> to vector<8x8xbf16>
    %38 = vector.shape_cast %35 : vector<8x8xbf16> to vector<1x1x8x8xbf16>
    tpu.vector_store %arg9[%c0_29, %c1, %c0_30, %c0_31], %38 {strides = array<i32>} : memref<1x4x8x8xbf16, #tpu.memory_space<vmem>>, vector<1x1x8x8xbf16>,
    %39 = vector.extract_strided_slice %13 {offsets = [0, 8], sizes = [8, 8], strides = [1, 1]} : vector<8x32xf32> to vector<8x8xf32>
    %40 = arith.truncf %39 : vector<8x8xf32> to vector<8x8xbf16>
    %c0_32 = arith.constant 0 : index
    %c1_33 = arith.constant 1 : index
    %c0_34 = arith.constant 0 : index
    %c0_35 = arith.constant 0 : index
    %41 = vector.load %arg10[%c0_32, %c1_33, %c0_34, %c0_35] : memref<1x4x8x8xbf16, #tpu.memory_space<vmem>>, vector<1x1x8x8xbf16>
    %42 = vector.shape_cast %41 : vector<1x1x8x8xbf16> to vector<8x8xbf16>
    %43 = vector.shape_cast %40 : vector<8x8xbf16> to vector<1x1x8x8xbf16>
    tpu.vector_store %arg10[%c0_32, %c1_33, %c0_34, %c0_35], %43 {strides = array<i32>} : memref<1x4x8x8xbf16, #tpu.memory_space<vmem>>, vector<1x1x8x8xbf16>,
    %44 = vector.extract_strided_slice %18 {offsets = [0, 8], sizes = [8, 8], strides = [1, 1]} : vector<8x32xf32> to vector<8x8xf32>
    %45 = arith.truncf %44 : vector<8x8xf32> to vector<8x8xbf16>
    %c0_36 = arith.constant 0 : index
    %c1_37 = arith.constant 1 : index
    %c0_38 = arith.constant 0 : index
    %c0_39 = arith.constant 0 : index
    %46 = vector.load %arg11[%c0_36, %c1_37, %c0_38, %c0_39] : memref<1x4x8x8xbf16, #tpu.memory_space<vmem>>, vector<1x1x8x8xbf16>
    %47 = vector.shape_cast %46 : vector<1x1x8x8xbf16> to vector<8x8xbf16>
    %48 = vector.shape_cast %45 : vector<8x8xbf16> to vector<1x1x8x8xbf16>
    tpu.vector_store %arg11[%c0_36, %c1_37, %c0_38, %c0_39], %48 {strides = array<i32>} : memref<1x4x8x8xbf16, #tpu.memory_space<vmem>>, vector<1x1x8x8xbf16>,
    %49 = vector.extract_strided_slice %8 {offsets = [0, 16], sizes = [8, 8], strides = [1, 1]} : vector<8x32xf32> to vector<8x8xf32>
    %50 = arith.truncf %49 : vector<8x8xf32> to vector<8x8xbf16>
    %c0_40 = arith.constant 0 : index
    %c2 = arith.constant 2 : index
    %c0_41 = arith.constant 0 : index
    %c0_42 = arith.constant 0 : index
    %51 = vector.load %arg9[%c0_40, %c2, %c0_41, %c0_42] : memref<1x4x8x8xbf16, #tpu.memory_space<vmem>>, vector<1x1x8x8xbf16>
    %52 = vector.shape_cast %51 : vector<1x1x8x8xbf16> to vector<8x8xbf16>
    %53 = vector.shape_cast %50 : vector<8x8xbf16> to vector<1x1x8x8xbf16>
    tpu.vector_store %arg9[%c0_40, %c2, %c0_41, %c0_42], %53 {strides = array<i32>} : memref<1x4x8x8xbf16, #tpu.memory_space<vmem>>, vector<1x1x8x8xbf16>,
    %54 = vector.extract_strided_slice %13 {offsets = [0, 16], sizes = [8, 8], strides = [1, 1]} : vector<8x32xf32> to vector<8x8xf32>
    %55 = arith.truncf %54 : vector<8x8xf32> to vector<8x8xbf16>
    %c0_43 = arith.constant 0 : index
    %c2_44 = arith.constant 2 : index
    %c0_45 = arith.constant 0 : index
    %c0_46 = arith.constant 0 : index
    %56 = vector.load %arg10[%c0_43, %c2_44, %c0_45, %c0_46] : memref<1x4x8x8xbf16, #tpu.memory_space<vmem>>, vector<1x1x8x8xbf16>
    %57 = vector.shape_cast %56 : vector<1x1x8x8xbf16> to vector<8x8xbf16>
    %58 = vector.shape_cast %55 : vector<8x8xbf16> to vector<1x1x8x8xbf16>
    tpu.vector_store %arg10[%c0_43, %c2_44, %c0_45, %c0_46], %58 {strides = array<i32>} : memref<1x4x8x8xbf16, #tpu.memory_space<vmem>>, vector<1x1x8x8xbf16>,
    %59 = vector.extract_strided_slice %18 {offsets = [0, 16], sizes = [8, 8], strides = [1, 1]} : vector<8x32xf32> to vector<8x8xf32>
    %60 = arith.truncf %59 : vector<8x8xf32> to vector<8x8xbf16>
    %c0_47 = arith.constant 0 : index
    %c2_48 = arith.constant 2 : index
    %c0_49 = arith.constant 0 : index
    %c0_50 = arith.constant 0 : index
    %61 = vector.load %arg11[%c0_47, %c2_48, %c0_49, %c0_50] : memref<1x4x8x8xbf16, #tpu.memory_space<vmem>>, vector<1x1x8x8xbf16>
    %62 = vector.shape_cast %61 : vector<1x1x8x8xbf16> to vector<8x8xbf16>
    %63 = vector.shape_cast %60 : vector<8x8xbf16> to vector<1x1x8x8xbf16>
    tpu.vector_store %arg11[%c0_47, %c2_48, %c0_49, %c0_50], %63 {strides = array<i32>} : memref<1x4x8x8xbf16, #tpu.memory_space<vmem>>, vector<1x1x8x8xbf16>,
    %64 = vector.extract_strided_slice %8 {offsets = [0, 24], sizes = [8, 8], strides = [1, 1]} : vector<8x32xf32> to vector<8x8xf32>
    %65 = arith.truncf %64 : vector<8x8xf32> to vector<8x8xbf16>
    %c0_51 = arith.constant 0 : index
    %c3 = arith.constant 3 : index
    %c0_52 = arith.constant 0 : index
    %c0_53 = arith.constant 0 : index
    %66 = vector.load %arg9[%c0_51, %c3, %c0_52, %c0_53] : memref<1x4x8x8xbf16, #tpu.memory_space<vmem>>, vector<1x1x8x8xbf16>
    %67 = vector.shape_cast %66 : vector<1x1x8x8xbf16> to vector<8x8xbf16>
    %68 = vector.shape_cast %65 : vector<8x8xbf16> to vector<1x1x8x8xbf16>
    tpu.vector_store %arg9[%c0_51, %c3, %c0_52, %c0_53], %68 {strides = array<i32>} : memref<1x4x8x8xbf16, #tpu.memory_space<vmem>>, vector<1x1x8x8xbf16>,
    %69 = vector.extract_strided_slice %13 {offsets = [0, 24], sizes = [8, 8], strides = [1, 1]} : vector<8x32xf32> to vector<8x8xf32>
    %70 = arith.truncf %69 : vector<8x8xf32> to vector<8x8xbf16>
    %c0_54 = arith.constant 0 : index
    %c3_55 = arith.constant 3 : index
    %c0_56 = arith.constant 0 : index
    %c0_57 = arith.constant 0 : index
    %71 = vector.load %arg10[%c0_54, %c3_55, %c0_56, %c0_57] : memref<1x4x8x8xbf16, #tpu.memory_space<vmem>>, vector<1x1x8x8xbf16>
    %72 = vector.shape_cast %71 : vector<1x1x8x8xbf16> to vector<8x8xbf16>
    %73 = vector.shape_cast %70 : vector<8x8xbf16> to vector<1x1x8x8xbf16>
    tpu.vector_store %arg10[%c0_54, %c3_55, %c0_56, %c0_57], %73 {strides = array<i32>} : memref<1x4x8x8xbf16, #tpu.memory_space<vmem>>, vector<1x1x8x8xbf16>,
    %74 = vector.extract_strided_slice %18 {offsets = [0, 24], sizes = [8, 8], strides = [1, 1]} : vector<8x32xf32> to vector<8x8xf32>
    %75 = arith.truncf %74 : vector<8x8xf32> to vector<8x8xbf16>
    %c0_58 = arith.constant 0 : index
    %c3_59 = arith.constant 3 : index
    %c0_60 = arith.constant 0 : index
    %c0_61 = arith.constant 0 : index
    %76 = vector.load %arg11[%c0_58, %c3_59, %c0_60, %c0_61] : memref<1x4x8x8xbf16, #tpu.memory_space<vmem>>, vector<1x1x8x8xbf16>
    %77 = vector.shape_cast %76 : vector<1x1x8x8xbf16> to vector<8x8xbf16>
    %78 = vector.shape_cast %75 : vector<8x8xbf16> to vector<1x1x8x8xbf16>
    tpu.vector_store %arg11[%c0_58, %c3_59, %c0_60, %c0_61], %78 {strides = array<i32>} : memref<1x4x8x8xbf16, #tpu.memory_space<vmem>>, vector<1x1x8x8xbf16>,
    return
  }
  func.func @transform_0(%arg0: i32, %arg1: i32) -> (i32, i32, i32) {
    %c0_i32 = arith.constant 0 : i32
    %c0_i32_0 = arith.constant 0 : i32
    return %arg0, %arg1, %c0_i32 : i32, i32, i32
  }
  func.func @transform_1(%arg0: i32, %arg1: i32) -> (i32, i32) {
    %c0_i32 = arith.constant 0 : i32
    %c0_i32_0 = arith.constant 0 : i32
    %c0_i32_1 = arith.constant 0 : i32
    return %c0_i32, %c0_i32_0 : i32, i32
  }
  func.func @transform_2(%arg0: i32, %arg1: i32) -> (i32, i32) {
    %c0_i32 = arith.constant 0 : i32
    %c0_i32_0 = arith.constant 0 : i32
    %c0_i32_1 = arith.constant 0 : i32
    return %c0_i32, %c0_i32_0 : i32, i32
  }
  func.func @transform_3(%arg0: i32, %arg1: i32) -> (i32, i32) {
    %c0_i32 = arith.constant 0 : i32
    %c0_i32_0 = arith.constant 0 : i32
    %c0_i32_1 = arith.constant 0 : i32
    return %c0_i32, %c0_i32_0 : i32, i32
  }
  func.func @transform_4(%arg0: i32, %arg1: i32) -> (i32, i32) {
    %c0_i32 = arith.constant 0 : i32
    %c0_i32_0 = arith.constant 0 : i32
    %c0_i32_1 = arith.constant 0 : i32
    return %c0_i32, %c0_i32_0 : i32, i32
  }
  func.func @transform_5(%arg0: i32, %arg1: i32) -> (i32, i32) {
    %c0_i32 = arith.constant 0 : i32
    %c0_i32_0 = arith.constant 0 : i32
    %c0_i32_1 = arith.constant 0 : i32
    return %c0_i32, %c0_i32_0 : i32, i32
  }
  func.func @transform_6(%arg0: i32, %arg1: i32) -> (i32, i32) {
    %c0_i32 = arith.constant 0 : i32
    %c0_i32_0 = arith.constant 0 : i32
    %c0_i32_1 = arith.constant 0 : i32
    return %c0_i32, %c0_i32_0 : i32, i32
  }
  func.func @transform_7(%arg0: i32, %arg1: i32) -> (i32, i32, i32, i32) {
    %c0_i32 = arith.constant 0 : i32
    %c0_i32_0 = arith.constant 0 : i32
    %c0_i32_1 = arith.constant 0 : i32
    return %arg0, %c0_i32, %arg1, %c0_i32_0 : i32, i32, i32, i32
  }
  func.func @transform_8(%arg0: i32, %arg1: i32) -> (i32, i32, i32, i32) {
    %c0_i32 = arith.constant 0 : i32
    %c0_i32_0 = arith.constant 0 : i32
    %c0_i32_1 = arith.constant 0 : i32
    return %arg0, %c0_i32, %arg1, %c0_i32_0 : i32, i32, i32, i32
  }
  func.func @transform_9(%arg0: i32, %arg1: i32) -> (i32, i32, i32, i32) {
    %c0_i32 = arith.constant 0 : i32
    %c0_i32_0 = arith.constant 0 : i32
    %c0_i32_1 = arith.constant 0 : i32
    return %arg0, %c0_i32, %arg1, %c0_i32_0 : i32, i32, i32, i32
  }
}

</mosaic_0001>

<bundles_post_ra>
// kernel: tpu_custom_call.1
= control target key start
LH: loop header
LB: loop body
LE: loop exit
PB: predicated region body
PF: predicated region fallthrough
CT: control target
= control target key end

     0   :  { %s1782_s0 = inlined_call_operand.hbm [shape: bf16[2,8,32], index: 0, kind: input, shape index: {}]   ;;  %s1783_s1 = inlined_call_operand.hbm [shape: bf16[32,32], index: 1, kind: input, shape index: {}]   ;;  %s1784_s2 = inlined_call_operand.vmem [shape: f32[1,32], index: 2, kind: input, shape index: {}]   ;;  %s1785_s3 = inlined_call_operand.hbm [shape: bf16[32,32], index: 3, kind: input, shape index: {}]   ;;  %s1786_s4 = inlined_call_operand.vmem [shape: f32[1,32], index: 4, kind: input, shape index: {}]   ;;  %s1787_s5 = inlined_call_operand.vmem [shape: bf16[32,32], index: 5, kind: input, shape index: {}]   ;;  %s1788_s6 = inlined_call_operand.vmem [shape: f32[1,32], index: 6, kind: input, shape index: {}]   ;;  %s1789_s7 = inlined_call_operand.hbm [shape: bf16[2,4,8,8], index: 7, kind: output, shape index: {0}]   ;;  %s1790_s8 = inlined_call_operand.hbm [shape: bf16[2,4,8,8], index: 8, kind: output, shape index: {1}]   ;;  %s1791_s9 = inlined_call_operand.hbm [shape: bf16[2,4,8,8], index: 9, kind: output, shape index: {2}]  }
   0x1   :  { %1801 = sst [smem:[#allocation18_spill]] %s1791_s9 }
   0x2   :  { %15 = vsyncpa [#allocation3], 0 }
   0x3   :  { %17 = vsyncpa [#allocation3 + $0x1], 0 }
   0x4   :  { %18 = vsyncpa [#allocation6], 0 }
   0x5   :  { %19 = vsyncpa [#allocation4], 0 }
   0x6   :  { %21 = vsyncpa [#allocation4 + $0x1], 0 }
   0x7   :  { %22 = vsyncpa [#allocation10], 0 }
   0x8   :  { %24 = vsyncpa [#allocation10 + $0x1], 0  ;;  %s1396_s30 = smov 0   ;;  %s1398_s10 = smov 0  }
   0x9   :  { %s1400_s11 = smov 0   ;;  %s1402_s12 = smov 0  }
   0xa   :  { %s1404_s13 = smov 0   ;;  %s1406_s14 = smov 0  }
   0xb LB: > { %1802 = sst [smem:[#allocation16_spill]] %s1309_s30  ;;  %s1427_s15 = sadd.s32 4294967295, %s1329_s14   ;;  %s1329_s14 = sphi %s1406_s14, %s30_s14   ;;  %s1325_s13 = sphi %s1404_s13, %s1828_s13   ;;  %s1321_s12 = sphi %s1402_s12, %s1827_s12   ;;  %s1317_s11 = sphi %s1400_s11, %s1826_s11   ;;  %s1313_s10 = sphi %s1398_s10, %s1825_s10   ;;  %s1309_s30 = sphi %s1396_s30, %s1824_s30  }
   0xc   : > { %s1792_s16 = sadd.s32 4294967294, %s1329_s14   ;;  %p64_p0 = scmp.ne.s32.totalorder %s1313_s10, %s1309_s30 }
   0xd   : > { %p1793_p1 = scmp.eq.s32.totalorder %s1427_s15, 0  ;;  %p222_p3 = scmp.eq.s32.totalorder %s1792_s16, 1 }
   0xe   : > { %p902_p5 = scmp.ge.s32.totalorder %s1329_s14, 1  ;;  %p285_p7 = scmp.lt.s32.totalorder %s1329_s14, 3 }
   0xf   : > { %p1438_p4 = por %p1793_p1, %p64_p0  ;;  %p1443_p6 = por %p222_p3, %p64_p0 }
  0x10   : > { %p1448_p8 = pnand %p902_p5, %p285_p7  ;;  %s1331_s20 = smov [#allocation5]  }
  0x11   : > { %s1803_s17 = scalar_select %p1438_p4, 1, 0 }
  0x12   : > { %s1804_s18 = scalar_select %p1443_p6, 1, 0 }
  0x13   : > { %s297_s21 = sshll.u32 %s1331_s20, 4  ;;  %p1005_p9 = pneg %p1448_p8  ;;  %s1452_s21 = int_to_ptr.vmem [resolvable:$true] %s297_s21 }
  0x14   : > { %1805 = sst [smem:[#allocation17_spill]] %s1804_s18  ;;  %s1332_s23 = smov [#allocation7]  }
  0x15   : > { %p1459_p11 = pnand %p1005_p9, %p1793_p1  ;;  %s313_s24 = sshll.u32 %s1332_s23, 4  ;;  %s1463_s24 = int_to_ptr.vmem [resolvable:$true] %s313_s24 }
  0x16   : > { %s1097_s27 = scalar_lea.hbm %s1783_s1, 256 }
  0x17   : > { %p1098_p12 = scmp.ne.s32.totalorder %s1783_s1, %s1097_s27  ;;  %p1099_p13 = pneg %p1459_p11 }
  0x18   : > { %p1104_p5 = scmp.lt.u32.totalorder %s1097_s27, %s1783_s1 }
  0x19   : > { %p1100_p0 = pnand %p1099_p13, %p1098_p12 }
  0x1b   : > { %p1101_p3 = pneg %p1100_p0 }
  0x1d   : > { %p1106_p7 = pnand %p1104_p5, %p1101_p3 }
  0x1f   : > { %1109 = shalt.err (!%p1106_p7)
}
  0x20   : > { %s1110_s23 = scalar_lea.vmem %s1452_s21, 256  ;;  %p1118_p2 = scmp.lt.s32.totalorder %s1452_s21, %s1452_s21 }
  0x21   : > { %p1111_p9 = scmp.ne.s32.totalorder %s1452_s21, %s1110_s23  ;;  %p1119_p12 = scmp.lt.s32.totalorder %s1110_s23, %s1110_s23 }
  0x23   : > { %p1113_p10 = pnand %p1111_p9, %p1099_p13  ;;  %p1120_p0 = por %p1119_p12, %p1118_p2 }
  0x25   : > { %p1114_p1 = pneg %p1113_p10 }
  0x27   : > { %p1121_p6 = pnand %p1120_p0, %p1114_p1 }
  0x29   : > { %1124 = shalt.err (!%p1121_p6)
}
  0x2a   : > { %s1333_s16 = smov 64   ;;  %s1334_s25 = smov 4  }
  0x2b   : > { %1008 = dma.hbm_to_vmem [thread:$0]  (!%p1459_p11), %s1783_s1, 256, %s1452_s21, [#allocation6], %s1333_s16, %s1333_s16, %s1334_s25  }
  0x2c   : > { %s1125_s20 = scalar_lea.hbm %s1785_s3, 256 }
  0x2d   : > { %p1126_p2 = scmp.ne.s32.totalorder %s1785_s3, %s1125_s20  ;;  %p1132_p10 = scmp.lt.u32.totalorder %s1125_s20, %s1785_s3 }
  0x2f   : > { %p1128_p1 = pnand %p1126_p2, %p1099_p13 }
  0x31   : > { %p1129_p6 = pneg %p1128_p1 }
  0x33   : > { %p1134_p3 = pnand %p1132_p10, %p1129_p6 }
  0x35   : > { %1137 = shalt.err (!%p1134_p3)
}
  0x36   : > { %s1138_s21 = scalar_lea.vmem %s1463_s24, 256  ;;  %p1146_p12 = scmp.lt.s32.totalorder %s1463_s24, %s1463_s24 }
  0x37   : > { %p1139_p5 = scmp.ne.s32.totalorder %s1463_s24, %s1138_s21  ;;  %p1147_p0 = scmp.lt.s32.totalorder %s1138_s21, %s1138_s21 }
  0x39   : > { %p1141_p7 = pnand %p1139_p5, %p1099_p13  ;;  %p1148_p2 = por %p1147_p0, %p1146_p12 }
  0x3b   : > { %p1142_p9 = pneg %p1141_p7 }
  0x3d   : > { %p1149_p1 = pnand %p1148_p2, %p1142_p9 }
  0x3f   : > { %1152 = shalt.err (!%p1149_p1)
}
  0x40   : > { %1011 = dma.hbm_to_vmem [thread:$0]  (!%p1459_p11), %s1785_s3, 256, %s1463_s24, [#allocation6], %s1333_s16, %s1333_s16, %s1334_s25  }
  0x41   : > { %s42_s18 = sadd.s32 1, %s1325_s13  ;;  %s51_s26 = sadd.s32 1, %s1317_s11 }
  0x42   : > { %p44_p13 = scmp.ge.s32.totalorder %s42_s18, 2  ;;  %p58_p6 = scmp.ne.s32.totalorder %s1317_s11, %s1313_s10 }
  0x43   : > { %p59_p10 = scmp.eq.s32.totalorder %s1329_s14, 0  ;;  %p1028_p3 = scmp.lt.s32.totalorder %s1329_s14, 2 }
  0x44   : > { %s1830_s18 = smov (%p44_p13, %s42_s18), 0  ;;  %p1808_p7 = scmp.eq.s32.totalorder %s1427_s15, 1 }
  0x45   : > { %p60_p5 = por %p59_p10, %p58_p6  ;;  %s46_s27 = ssub.s32 %s1325_s13, %s1830_s18 }
  0x46   : > { %p1527_p9 = por %p1808_p7, %p58_p6  ;;  %s336_s28 = sand.u32 1, %s1317_s11  }
  0x47   : > { %p49_p12 = scmp.eq.s32.totalorder %s46_s27, 0  ;;  %s906_s24 = sshll.u32 %s336_s28, 2 }
  0x48   : > { %s1809_s22 = scalar_select %p1527_p9, 1, 0 }
  0x49   : > { %s907_s16 = sshll.u32 %s1325_s13, 6  ;;  %s340_s21 = scalar_lea.vmem [#allocation2], %s906_s24 }
  0x4a   : > { %s1536_s25 = scalar_select %p49_p12, %s1317_s11, %s51_s26  }
  0x4b   : > { %s1541_s23 = scalar_lea.hbm %s1782_s0, %s907_s16  ;;  %s348_s9 = sshll.u32 %s340_s21, 4  ;;  %s1549_s9 = int_to_ptr.vmem [resolvable:$true] %s348_s9 }
  0x4c   : > { %p1545_p11 = pnand %p1028_p3, %p60_p5  ;;  %s337_s26 = scalar_lea.sflag [#allocation3], %s336_s28 }
  0x4d   : > { %s1153_s27 = scalar_lea.hbm %s1541_s23, 64  ;;  %s1158_s29 = scalar_lea.hbm %s1782_s0, 128 }
  0x4e   : > { %p1154_p0 = scmp.ne.s32.totalorder %s1541_s23, %s1153_s27  ;;  %p1155_p2 = pneg %p1545_p11 }
  0x4f   : > { %p1159_p6 = scmp.lt.u32.totalorder %s1541_s23, %s1782_s0  ;;  %p1160_p10 = scmp.lt.u32.totalorder %s1158_s29, %s1153_s27 }
  0x50   : > { %p1156_p1 = pnand %p1155_p2, %p1154_p0  ;;  %p1162_p5 = scmp.lt.u32.totalorder %s1153_s27, %s1541_s23 }
  0x51   : > { %p1161_p3 = por %p1160_p10, %p1159_p6 }
  0x52   : > { %p1157_p13 = pneg %p1156_p1 }
  0x53   : > { %p1163_p7 = por %p1162_p5, %p1161_p3 }
  0x55   : > { %p1164_p12 = pnand %p1163_p7, %p1157_p13 }
  0x57   : > { %1167 = shalt.err (!%p1164_p12)
}
  0x58   : > { %s1168_s28 = scalar_lea.vmem %s1549_s9, 64  ;;  %s1335_s24 = smov [#allocation2]  }
  0x59   : > { %p1169_p0 = scmp.ne.s32.totalorder %s1549_s9, %s1168_s28  ;;  %s1173_s16 = sshll.u32 %s1335_s24, 4  ;;  %s1174_s16 = int_to_ptr.vmem [resolvable:$false] %s1173_s16 }
  0x5a   : > { %s1175_s20 = scalar_lea.vmem %s1174_s16, 128  ;;  %p1176_p4 = scmp.lt.s32.totalorder %s1549_s9, %s1174_s16 }
  0x5b   : > { %p1171_p1 = pnand %p1169_p0, %p1155_p2  ;;  %p1177_p6 = scmp.lt.s32.totalorder %s1175_s20, %s1168_s28 }
  0x5d   : > { %p1172_p9 = pneg %p1171_p1  ;;  %p1178_p10 = por %p1177_p6, %p1176_p4 }
  0x5f   : > { %p1179_p3 = pnand %p1178_p10, %p1172_p9 }
  0x61   : > { %1182 = shalt.err (!%p1179_p3)
}
  0x62   : > { %1015 = dma.hbm_to_vmem [thread:$0]  (!%p1545_p11), %s1541_s23, 64, %s1549_s9, %s337_s26  }
  0x63   : > { %357 = sbr.rel (%p1448_p8) target bundleno = 518 (0x206), region = 48  ;;  %s1579_s27 = sand.u32 (!%p1448_p8), 1, %s1313_s10  }
  0x64   : > { %s909_s29 = sshll.u32 (!%p1448_p8), %s1579_s27, 2  ;;  %s360_s21 = scalar_lea.sflag (!%p1448_p8), [#allocation3], %s1579_s27 }
  0x65   : > { %s363_s28 = scalar_lea.vmem (!%p1448_p8), [#allocation2], %s909_s29  ;;  %p1811_p4 = scmp.ne.s32.totalorder (!%p1448_p8), %s1803_s17, 0 }
  0x6a   : > { %1292 = dma.done.wait (%p1811_p4), %s360_s21, 64  }
  0x6b   : > { %1294 = vsyncadd (%p1811_p4), %s360_s21, 4294967232  ;;  %p1812_p9 = scmp.eq.s32.totalorder %s1427_s15, 0 }
  0x6d   : > { %1296 = dma.done.wait (%p1812_p9), [#allocation6], 512   ;;  %p1813_p11 = pmov %p1812_p9 }
  0x6e   : > { %v1336_v0 = vmov 0.0   ;;  %vm1337_vm0 = vmmov 0   ;;  %v1091_v1 = vld [vmem:[#allocation5] sm:$0xff]   ;;  %v1092_v2 = vld [vmem:[#allocation7] sm:$0xff]   ;;  %v1093_v3 = vld [vmem:[#allocation5 + $0x8] sm:$0xff]   ;;  %vm441_vm1 = vcmask 261120  }
  0x6f   : > { %1298 = vsyncadd (%p1813_p11), [#allocation6], 4294966784  ;;  %965 = vmatprep.subr.bf16.mxu0 %v1336_v0  ;;  %973 = vmatprep.subr.bf16.mxu1 %v1336_v0  ;;  %v1094_v4 = vld [vmem:[#allocation7 + $0x8] sm:$0xff]   ;;  %v1095_v6 = vld [vmem:[%s1787_s5] sm:$0xff]   ;;  %s1604_s24 = sshll.u32 %s1579_s27, 4  ;;  %vm613_vm2 = vcmask 60416  }
  0x70   : > { %969 = vmatprep.mubr.msk.bf16.mxu0 %vm1337_vm0, %v1336_v0  ;;  %977 = vmatprep.mubr.msk.bf16.mxu1 %vm1337_vm0, %v1336_v0  ;;  %v417_v5 = vld [vmem:[%s363_s28] sm:$0xf]  ;;  %v1096_v7 = vld [vmem:[%s1787_s5 + $0x8] sm:$0xff]   ;;  %v915_v8 = vld [vmem:[%s1784_s2] ss:$0 sm:$0xff]  ;;  %s1610_s29 = scalar_lea.vmem [#allocation9], %s1604_s24 }
  0x71   : > { %966 = vmatpush3.bf16.msra.mxu0 %v1091_v1  ;;  %974 = vmatpush3.bf16.msra.mxu1 %v1092_v2  ;;  %v919_v9 = vld [vmem:[%s1786_s4] ss:$0 sm:$0xff]  ;;  %s1338_s21 = smov 104   ;;  %s1339_s28 = smov 120  }
  0x72   : > { %967 = vmatprep.subr.bf16.mxu0 %v1336_v0  ;;  %975 = vmatprep.subr.bf16.mxu1 %v1336_v0  ;;  %v923_v23 = vld [vmem:[%s1788_s6] ss:$0 sm:$0xff]  ;;  %s1618_s23 = scalar_lea.vmem [#allocation8], %s1604_s24  ;;  %s1340_s9 = smov 112  }
  0x73   : > { %s1623_s30 = scalar_lea.vmem [#allocation11], %s1604_s24  ;;  %s715_s26 = sshll.u32 %s1610_s29, 4  ;;  %s1632_s26 = int_to_ptr.vmem [resolvable:$true] %s715_s26 }
  0x74   : > { %s678_s16 = sand.u32 1, %s1427_s15   ;;  %s1630_s20 = sshll.u32 %s1321_s12, 8 }
  0x75   : > { %968 = vmatpush3.bf16.msra.mxu0 %v1093_v3  ;;  %976 = vmatpush3.bf16.msra.mxu1 %v1094_v4  ;;  %s1648_s12 = scalar_lea.sflag [#allocation10], %s678_s16  ;;  %s1183_s15 = scalar_lea.vmem %s1632_s26, 256 }
  0x76   : > { %981 = vmatprep.subr.bf16.mxu0 %v1336_v0  ;;  %p1184_p8 = scmp.ne.s32.totalorder %s1632_s26, %s1183_s15  ;;  %p1814_p2 = scmp.ne.s32.totalorder %s1809_s22, 0 }
  0x77   : > { %s1341_s17 = smov [#allocation9]  }
  0x78   : > { %970 = vmatmul.mubr.msk.bf16.vlgmr.msra.gmra.mrb[0].mxu0 %vm441_vm1, %v417_v5  ;;  %978 = vmatmul.mubr.msk.bf16.vlgmr.msra.gmra.mrb[0].mxu1 %vm441_vm1, %v417_v5  ;;  %p1185_p13 = pnand %p1184_p8, %p1814_p2  ;;  %s1187_s19 = sshll.u32 %s1341_s17, 4  ;;  %s1188_s19 = int_to_ptr.vmem [resolvable:$false] %s1187_s19 }
  0x79   : > { %982 = vmatpush3.bf16.msra.mxu0 %v1095_v6  ;;  %985 = vmatprep.mubr.msk.bf16.mxu0 %vm1337_vm0, %v1336_v0  ;;  %p1190_p7 = scmp.lt.s32.totalorder %s1632_s26, %s1188_s19 }
  0x7a   : > { %983 = vmatprep.subr.bf16.mxu0 %v1336_v0  ;;  %p1186_p5 = pneg %p1185_p13 }
  0x7d   : > { %984 = vmatpush3.bf16.msra.mxu0 %v1096_v7 }
  0x80   : > { %986 = vmatmul.mubr.msk.bf16.vlgmr.msra.gmra.mrb[4].mxu0 %vm441_vm1, %v417_v5 }
 0x14b   : > { %v479_v10 = vpop.f32.mrb[0].mxu0  ;;  %v543_v12 = vpop.f32.mrb[0].mxu1 }
 0x14c   : > { %v480_v11 = vadd.f32 %v915_v8, %v479_v10  ;;  %v971_v13 = vpop.f32.mrb[1].mxu0  ;;  %v544_v14 = vadd.f32 %v919_v9, %v543_v12  ;;  %v979_v15 = vpop.f32.mrb[1].mxu1 }
 0x14d   : > { %v482_v16 = vpop.f32.mrb[2].mxu0  ;;  %v546_v18 = vpop.f32.mrb[2].mxu1 }
 0x14e   : > { %v485_v17 = vmul.f32 0.35355338, %v480_v11  ;;  %v972_v19 = vpop.f32.mrb[3].mxu0  ;;  %v615_v20 = vpack.c.bf16 %v544_v14, %v544_v14  ;;  %v980_v21 = vpop.f32.mrb[3].mxu1 }
 0x150   : > { %v612_v22 = vpack.c.bf16 %v485_v17, %v485_v17  ;;  %616 = vst.msk [vmem:[%s1610_s29] sm:$0xf] %vm613_vm2, %v615_v20  ;;  %663 = vrot.lane.b32.xlu1 %v615_v20, %s1338_s21  ;;  %630 = vrot.lane.b32.xlu0 %v615_v20, %s1339_s28 }
 0x152   : > { %614 = vst.msk [vmem:[%s1618_s23] sm:$0xf] %vm613_vm2, %v612_v22 }
 0x153   : > { %v606_v24 = vpop.f32.mrb[4].mxu0 }
 0x154   : > { %v607_v25 = vadd.f32 %v923_v23, %v606_v24  ;;  %v987_v26 = vpop.f32.mrb[5].mxu0  ;;  %648 = vrot.lane.b32.xlu0 %v615_v20, %s1340_s9  ;;  %622 = vrot.lane.b32.xlu1 %v612_v22, %s1339_s28 }
 0x155   : > { %v609_v27 = vpop.f32.mrb[6].mxu0 }
 0x156   : > { %v617_v28 = vpack.c.bf16 %v607_v25, %v607_v25  ;;  %v988_v29 = vpop.f32.mrb[7].mxu0 }
 0x158   : > { %618 = vst.msk [vmem:[%s1623_s30] sm:$0xf] %vm613_vm2, %v617_v28  ;;  %643 = vrot.lane.b32.xlu1 %v612_v22, %s1340_s9  ;;  %638 = vrot.lane.b32.xlu0 %v617_v28, %s1339_s28 }
 0x15c   : > { %658 = vrot.lane.b32.xlu1 %v612_v22, %s1338_s21  ;;  %653 = vrot.lane.b32.xlu0 %v617_v28, %s1340_s9  ;;  %s1189_s9 = scalar_lea.vmem %s1188_s19, 512 }
 0x15d   : > { %p1191_p12 = scmp.lt.s32.totalorder %s1189_s9, %s1183_s15 }
 0x15f   : > { %p1192_p0 = por %p1191_p12, %p1190_p7 }
 0x160   : > { %668 = vrot.lane.b32.xlu0 %v617_v28, %s1338_s21  ;;  %s1642_s21 = scalar_lea.hbm %s1790_s8, %s1630_s20 }
 0x161   : > { %p1193_p1 = pnand %p1192_p0, %p1186_p5 }
 0x1c2   : > { %v664_v30 = vpop.permute.xlu1 %663  ;;  %v631_v31 = vpop.permute.xlu0 %630 }
 0x1c3   : > { %937 = vst.msk [vmem:[%s1610_s29 + $0xc] sm:$0xf] %vm613_vm2, %v664_v30  ;;  %930 = vst.msk [vmem:[%s1610_s29 + $0x4] sm:$0xf] %vm613_vm2, %v631_v31 }
 0x1c6   : > { %v649_v32 = vpop.permute.xlu0 %648  ;;  %v623_v33 = vpop.permute.xlu1 %622 }
 0x1c7   : > { %934 = vst.msk [vmem:[%s1610_s29 + $0x8] sm:$0xf] %vm613_vm2, %v649_v32  ;;  %928 = vst.msk [vmem:[%s1618_s23 + $0x4] sm:$0xf] %vm613_vm2, %v623_v33 }
 0x1c8   : > { %1196 = shalt.err (!%p1193_p1)
}
 0x1c9   : > { %s1197_s29 = scalar_lea.hbm %s1642_s21, 256  ;;  %s1201_s28 = scalar_lea.hbm %s1790_s8, 512 }
 0x1ca   : > { %p1198_p6 = scmp.ne.s32.totalorder %s1642_s21, %s1197_s29  ;;  %p1202_p4 = scmp.lt.u32.totalorder %s1642_s21, %s1790_s8 }
 0x1cb   : > { %p1203_p9 = scmp.lt.u32.totalorder %s1201_s28, %s1197_s29  ;;  %p1205_p8 = scmp.lt.u32.totalorder %s1197_s29, %s1642_s21 }
 0x1cc   : > { %p1199_p10 = pnand %p1198_p6, %p1814_p2 }
 0x1cd   : > { %p1204_p11 = por %p1203_p9, %p1202_p4 }
 0x1ce   : > { %p1200_p3 = pneg %p1199_p10 }
 0x1cf   : > { %p1206_p13 = por %p1205_p8, %p1204_p11 }
 0x1d1   : > { %p1207_p5 = pnand %p1206_p13, %p1200_p3 }
 0x1d3   : > { %1210 = shalt.err (!%p1207_p5)
}
 0x1d4   : > { %s1799_s15 = smov 64   ;;  %s1343_s9 = smov 4   ;;  %v644_v34 = vpop.permute.xlu1 %643  ;;  %v639_v35 = vpop.permute.xlu0 %638 }
 0x1d5   : > { %1000 = dma.vmem_to_hbm [thread:$0]  (%p1814_p2), %s1632_s26, 256, %s1642_s21, %s1648_s12, %s1799_s15, %s1799_s15, %s1343_s9  }
 0x1d6   : > { %s698_s29 = sshll.u32 %s1618_s23, 4  ;;  %933 = vst.msk [vmem:[%s1618_s23 + $0x8] sm:$0xf] %vm613_vm2, %v644_v34  ;;  %932 = vst.msk [vmem:[%s1623_s30 + $0x4] sm:$0xf] %vm613_vm2, %v639_v35  ;;  %s1686_s28 = scalar_lea.hbm %s1789_s7, %s1630_s20  ;;  %s1680_s29 = int_to_ptr.vmem [resolvable:$true] %s698_s29 }
 0x1d7   : > { %s1211_s21 = scalar_lea.vmem %s1680_s29, 256  ;;  %s1344_s19 = smov [#allocation8]  }
 0x1d8   : > { %v659_v36 = vpop.permute.xlu1 %658  ;;  %v654_v37 = vpop.permute.xlu0 %653  ;;  %p1212_p7 = scmp.ne.s32.totalorder %s1680_s29, %s1211_s21  ;;  %s1215_s16 = sshll.u32 %s1344_s19, 4  ;;  %s1216_s16 = int_to_ptr.vmem [resolvable:$false] %s1215_s16 }
 0x1d9   : > { %936 = vst.msk [vmem:[%s1618_s23 + $0xc] sm:$0xf] %vm613_vm2, %v659_v36  ;;  %935 = vst.msk [vmem:[%s1623_s30 + $0x8] sm:$0xf] %vm613_vm2, %v654_v37  ;;  %s1217_s24 = scalar_lea.vmem %s1216_s16, 512  ;;  %p1218_p1 = scmp.lt.s32.totalorder %s1680_s29, %s1216_s16 }
 0x1da   : > { %p1213_p12 = pnand %p1212_p7, %p1814_p2  ;;  %p1219_p6 = scmp.lt.s32.totalorder %s1217_s24, %s1211_s21 }
 0x1dc   : > { %p1214_p0 = pneg %p1213_p12  ;;  %p1220_p10 = por %p1219_p6, %p1218_p1 }
 0x1de   : > { %p1221_p3 = pnand %p1220_p10, %p1214_p0 }
 0x1e0   : > { %1224 = shalt.err (!%p1221_p3)
}
 0x1e1   : > { %s1225_s23 = scalar_lea.hbm %s1686_s28, 256  ;;  %s1229_s19 = scalar_lea.hbm %s1789_s7, 512 }
 0x1e2   : > { %p1226_p4 = scmp.ne.s32.totalorder %s1686_s28, %s1225_s23  ;;  %p1230_p8 = scmp.lt.u32.totalorder %s1686_s28, %s1789_s7 }
 0x1e3   : > { %p1231_p13 = scmp.lt.u32.totalorder %s1229_s19, %s1225_s23  ;;  %p1233_p7 = scmp.lt.u32.totalorder %s1225_s23, %s1686_s28 }
 0x1e4   : > { %p1227_p9 = pnand %p1226_p4, %p1814_p2 }
 0x1e5   : > { %p1232_p5 = por %p1231_p13, %p1230_p8 }
 0x1e6   : > { %p1228_p11 = pneg %p1227_p9 }
 0x1e7   : > { %p1234_p12 = por %p1233_p7, %p1232_p5 }
 0x1e9   : > { %p1235_p0 = pnand %p1234_p12, %p1228_p11 }
 0x1eb   : > { %1238 = shalt.err (!%p1235_p0)
}
 0x1ec   : > { %s1815_s21 = smov 64   ;;  %s1816_s24 = scalar_lea.sflag [#allocation4], %s1579_s27  ;;  %v669_v38 = vpop.permute.xlu0 %668 }
 0x1ed   : > { %999 = dma.vmem_to_hbm [thread:$0]  (%p1814_p2), %s1680_s29, 256, %s1686_s28, %s1816_s24, %s1815_s21, %s1815_s21, %s1343_s9  }
 0x1ee   : > { %s1817_s15 = sshll.u32 %s1623_s30, 4  ;;  %s1818_s23 = sld [smem:[#allocation18_spill]]  ;;  %938 = vst.msk [vmem:[%s1623_s30 + $0xc] sm:$0xf] %vm613_vm2, %v669_v38  ;;  %s1722_s15 = int_to_ptr.vmem [resolvable:$true] %s1817_s15 }
 0x1ef   : > { %s1239_s27 = scalar_lea.vmem %s1722_s15, 256  ;;  %s1345_s29 = smov [#allocation11]  }
 0x1f0   : > { %p1240_p1 = scmp.ne.s32.totalorder %s1722_s15, %s1239_s27  ;;  %s1243_s28 = sshll.u32 %s1345_s29, 4  ;;  %s1244_s28 = int_to_ptr.vmem [resolvable:$false] %s1243_s28 }
 0x1f1   : > { %s1245_s16 = scalar_lea.vmem %s1244_s28, 512  ;;  %p1246_p3 = scmp.lt.s32.totalorder %s1722_s15, %s1244_s28 }
 0x1f2   : > { %p1241_p6 = pnand %p1240_p1, %p1814_p2  ;;  %p1247_p4 = scmp.lt.s32.totalorder %s1245_s16, %s1239_s27 }
 0x1f4   : > { %s1728_s19 = scalar_lea.hbm %s1818_s23, %s1630_s20  ;;  %p1242_p10 = pneg %p1241_p6 }
 0x1f5   : > { %p1248_p9 = por %p1247_p4, %p1246_p3 }
 0x1f7   : > { %p1249_p11 = pnand %p1248_p9, %p1242_p10 }
 0x1f9   : > { %1252 = shalt.err (!%p1249_p11)
}
 0x1fa   : > { %s1253_s30 = scalar_lea.hbm %s1728_s19, 256  ;;  %s1257_s17 = scalar_lea.hbm %s1818_s23, 512 }
 0x1fb   : > { %p1254_p8 = scmp.ne.s32.totalorder %s1728_s19, %s1253_s30  ;;  %p1258_p7 = scmp.lt.u32.totalorder %s1728_s19, %s1818_s23 }
 0x1fc   : > { %p1259_p12 = scmp.lt.u32.totalorder %s1257_s17, %s1253_s30  ;;  %p1261_p1 = scmp.lt.u32.totalorder %s1253_s30, %s1728_s19 }
 0x1fd   : > { %p1255_p13 = pnand %p1254_p8, %p1814_p2 }
 0x1fe   : > { %p1260_p0 = por %p1259_p12, %p1258_p7 }
 0x1ff   : > { %p1256_p5 = pneg %p1255_p13 }
 0x200   : > { %p1262_p6 = por %p1261_p1, %p1260_p0 }
 0x202   : > { %p1263_p10 = pnand %p1262_p6, %p1256_p5 }
 0x204   : > { %1266 = shalt.err (!%p1263_p10)
}
 0x205   : > { %1001 = dma.vmem_to_hbm [thread:$0]  (%p1814_p2), %s1722_s15, 256, %s1728_s19, %s1648_s12, %s1815_s21, %s1815_s21, %s1343_s9  }
 0x206 PF: > { %s1819_s27 = sld [smem:[#allocation16_spill]]  ;;  %s1820_s28 = sld [smem:[#allocation17_spill]] }
 0x207   : > { %p1822_p4 = scmp.ge.s32.totalorder %s1329_s14, 2 }
 0x20c   : > { %s747_s16 = sand.u32 1, %s1819_s27   ;;  %p1821_p3 = scmp.ne.s32.totalorder %s1820_s28, 0 }
 0x20d   : > { %s748_s30 = scalar_lea.sflag [#allocation4], %s747_s16 }
 0x20e   : > { %p1017_p9 = pnand %p1822_p4, %p1821_p3 }
 0x210   : > { %1300 = dma.done.wait (!%p1017_p9), %s748_s30, 256  }
 0x211   : > { %1302 = vsyncadd (!%p1017_p9), %s748_s30, 4294967040  ;;  %s1823_s22 = sadd.s32 4294967294, %s1329_s14  }
 0x212   : > { %s756_s20 = sand.u32 1, %s1823_s22  }
 0x213   : > { %s757_s24 = scalar_lea.sflag [#allocation10], %s756_s20 }
 0x214   : > { %1304 = dma.done.wait (!%p1017_p9), %s757_s24, 512  }
 0x215   : > { %1306 = vsyncadd (!%p1017_p9), %s757_s24, 4294966784  ;;  %s30_s14 = sadd.s32 1, %s1329_s14   ;;  %s1824_s30 = smov %s1313_s10 }
 0x216   : > { %p27_p2 = scmp.ge.s32.totalorder %s30_s14, 4   ;;  %s1825_s10 = smov %s1317_s11 }
 0x217   : > { %s1826_s11 = smov %s1536_s25  ;;  %s1827_s12 = smov %s1325_s13 }
 0x218   : > { %s1828_s13 = smov %s1830_s18  ;;  %29 = sbr.rel (!%p27_p2) target bundleno = 11 (0xb), region = 142 }
 0x21f   :  { %771 = vsyncpa [#allocation3], 1 }
 0x220   :  { %773 = vsyncpa [#allocation3 + $0x1], 1 }
 0x221   :  { %774 = vsyncpa [#allocation6], 1 }
 0x222   :  { %775 = vsyncpa [#allocation4], 1 }
 0x223   :  { %777 = vsyncpa [#allocation4 + $0x1], 1 }
 0x224   :  { %778 = vsyncpa [#allocation10], 1 }
 0x225   :  { %780 = vsyncpa [#allocation10 + $0x1], 1 }

</bundles_post_ra>
